<compile_context>
chip_gen: v5e
topology: v5e:2x2
jax: 0.10.0
libtpu: 0.0.40
codegen_flags: <defaults>
</compile_context>

<pallas_src>
import math

import numpy as np
import jax
import jax.numpy as jnp
from jax import lax
from jax.experimental import pallas as pl
from jax.experimental.pallas import tpu as pltpu

LANES = 128
SUBLANES = 8
_CENTER_FREQS = [20, 60, 100, 250, 400, 630, 900, 1200, 1600, 2000, 2500,
                 3150, 4000, 5000, 6300, 8000, 10000, 12500, 16000, 20000]


def _prev_lane(row):
    """out[:, i] = row[:, i - 1] (wrap at 0; wrap lanes are always masked by caller)."""
    return pltpu.roll(row, shift=1, axis=1)


def _make_kernel(L, K, nkp):
    """Kernel over an (L, nkp) slab: lane = channel*K + time_block, sublane = in-block time."""
    n_chunks = L // SUBLANES

    def kernel(coef_ref, blk_ref, h1_ref, h2_ref, x_ref, o_ref):
        # scalars (SMEM): a0-normalized biquad, Vol gain, boundary transition entries
        b0 = coef_ref[0]; b1 = coef_ref[1]; b2 = coef_ref[2]
        a1 = coef_ref[3]; a2 = coef_ref[4]; g = coef_ref[5]
        h1_l1 = coef_ref[6]; h2_l1 = coef_ref[7]     # h1[L-1], h2[L-1]
        h1_l2 = coef_ref[8]; h2_l2 = coef_ref[9]     # h1[L-2], h2[L-2]

        blk = blk_ref[...]                            # (1, nkp) int32: time-block id of lane
        first_blk = blk == 0

        # ------------------ FIR feed-forward (fully vectorized) ------------------
        x = x_ref[...]                                # (L, nkp)
        # last two input samples of the *previous* time block of the same channel
        p1 = jnp.where(first_blk, 0.0, _prev_lane(x[L - 1:L, :]))       # x[t0-1]
        p2 = jnp.where(first_blk, 0.0, _prev_lane(x[L - 2:L - 1, :]))   # x[t0-2]
        xm1 = jnp.concatenate([p1, x[:L - 1, :]], axis=0)               # x[t-1]
        xm2 = jnp.concatenate([p2, p1, x[:L - 2, :]], axis=0)           # x[t-2]
        o_ref[...] = b0 * x + b1 * xm1 + b2 * xm2                       # f[t]

        # --------------- 2-tap feedback, 8 rows (one f32 vreg) per step ----------
        a1v = jnp.full((1, nkp), a1, jnp.float32)     # hoisted broadcasts
        a2v = jnp.full((1, nkp), a2, jnp.float32)

        def chunk(c, carry):
            y1, y2 = carry
            base = pl.multiple_of(c * SUBLANES, SUBLANES)
            fch = o_ref[pl.ds(base, SUBLANES), :]     # full-tile load of f
            rows = []
            for i in range(SUBLANES):                 # unrolled: chain = 2 mul-adds/step
                y0 = fch[i:i + 1, :] - a1v * y1 - a2v * y2
                rows.append(y0)
                y2 = y1
                y1 = y0
            o_ref[pl.ds(base, SUBLANES), :] = jnp.concatenate(rows, axis=0)
            return (y1, y2)

        # per-block recurrence seeded with (x[t0-1], x[t0-2]); the exact state is
        # restored below -- the seed just keeps the f32 intermediates well conditioned.
        u_last1, u_last2 = lax.fori_loop(0, n_chunks, chunk, (p1, p2))

        # ---------- boundary-state scan across the K time blocks (serial K) -------
        c1p = _prev_lane(u_last1)                     # u[L-1] of the previous block
        c2p = _prev_lane(u_last2)                     # u[L-2] of the previous block
        zero = jnp.zeros((1, nkp), jnp.float32)

        def bscan(k, carry):
            d1, d2 = carry                            # d = (true y state) - (seed state)
            pd1 = _prev_lane(d1)
            pd2 = _prev_lane(d2)
            n1 = c1p + h1_l1 * pd1 + h2_l1 * pd2 - p1
            n2 = c2p + h1_l2 * pd1 + h2_l2 * pd2 - p2
            sel = blk == k
            return (jnp.where(sel, n1, d1), jnp.where(sel, n2, d2))

        d1, d2 = lax.fori_loop(1, K, bscan, (zero, zero))

        # -------------- rank-2 fixup + lfilter clamp + Vol gain clamp -------------
        y = (o_ref[...]
             + h1_ref[...] * jnp.broadcast_to(d1, (L, nkp))
             + h2_ref[...] * jnp.broadcast_to(d2, (L, nkp)))
        o_ref[...] = jnp.clip(jnp.clip(y, -1.0, 1.0) * g, -1.0, 1.0)

    return kernel


def _design_peaking_eq(center_freq, gain_db, Q, sr):
    """torchaudio.functional.equalizer_biquad coefficients, a0-normalized."""
    w0 = 2.0 * math.pi * center_freq / float(sr)
    A = math.exp(gain_db / 40.0 * math.log(10.0))
    alpha = math.sin(w0) / 2.0 / Q
    a0 = 1.0 + alpha / A
    b0 = (1.0 + alpha * A) / a0
    b1 = (-2.0 * math.cos(w0)) / a0
    b2 = (1.0 - alpha * A) / a0
    a1 = (-2.0 * math.cos(w0)) / a0
    a2 = (1.0 - alpha / A) / a0
    return b0, b1, b2, a1, a2


def _homogeneous_responses(a1, a2, L):
    """h1[l], h2[l]: zero-input responses to initial states (y[-1],y[-2]) = (1,0) / (0,1)."""
    h1 = np.zeros((L,), np.float64)
    h2 = np.zeros((L,), np.float64)
    y1a, y2a = 1.0, 0.0
    y1b, y2b = 0.0, 1.0
    for t in range(L):
        va = -a1 * y1a - a2 * y2a
        vb = -a1 * y1b - a2 * y2b
        h1[t] = va
        h2[t] = vb
        y2a, y1a = y1a, va
        y2b, y1b = y1b, vb
    return h1.astype(np.float32), h2.astype(np.float32)


def audio_preprocessor_forward(waveform, sr, *, eq_chance=1.0, gain_chance=1.0, seed=0):
    """JAX/Pallas equivalent of AudioPreprocessor.forward(waveform, sr).

    waveform: (B, C, T) float32 (time last, as in torchaudio). Random choices are
    drawn from numpy RandomState(seed), mirroring the np.random calls in the module.
    """
    rng = np.random.RandomState(seed)
    wf = jnp.asarray(waveform, jnp.float32)
    B, C, T = wf.shape
    N = B * C

    # Identity filter / unit gain unless the random branches fire.
    b0, b1, b2, a1, a2 = 1.0, 0.0, 0.0, 0.0, 0.0
    gain = 1.0
    # TODO(synk): when eq_chance/gain_chance < 1 and a branch is skipped, the final
    # clamp to [-1, 1] is still applied (no-op for in-range audio).
    if rng.random() < eq_chance:
        center_freq = float(rng.choice(_CENTER_FREQS))
        gain_db = float(rng.uniform(-6.0, 6.0))
        b0, b1, b2, a1, a2 = _design_peaking_eq(center_freq, gain_db, 0.707, sr)
    if rng.random() < gain_chance:
        gain = float(rng.uniform(-6.0, 6.0))

    # ---- block-parallel layout: lanes = channels x time-blocks ------------------
    K = max(1, LANES // N)                     # time blocks per channel (fill 128 lanes)
    K = min(K, max(1, T // SUBLANES))          # keep blocks at least 8 samples long
    L = -(-T // K)
    L = -(-L // SUBLANES) * SUBLANES           # block length, multiple of 8
    T_pad = K * L
    NK = N * K
    NK_pad = -(-NK // LANES) * LANES

    h1, h2 = _homogeneous_responses(a1, a2, L)
    coeffs = jnp.asarray(
        [b0, b1, b2, a1, a2, gain,
         h1[L - 1], h2[L - 1], h1[L - 2], h2[L - 2]], dtype=jnp.float32)
    blk_idx = jnp.asarray((np.arange(NK_pad, dtype=np.int32) % np.int32(K)).reshape(1, NK_pad))
    h1j = jnp.asarray(h1.reshape(L, 1))
    h2j = jnp.asarray(h2.reshape(L, 1))

    # (B, C, T) -> (L, N*K): lane = n*K + k, sublane = position inside block k.
    x = jnp.reshape(wf, (N, T))
    if T_pad != T:
        x = jnp.pad(x, ((0, 0), (0, T_pad - T)))
    x = jnp.reshape(x, (N, K, L))
    x = jnp.reshape(jnp.transpose(x, (2, 0, 1)), (L, NK))
    if NK_pad != NK:
        x = jnp.pad(x, ((0, 0), (0, NK_pad - NK)))

    # Large slabs need more scoped VMEM than the per-chip defaults (esp. v5e 16 MiB).
    slab_bytes = L * NK_pad * 4
    extra = {}
    if 8 * slab_bytes > (24 << 20):
        extra["compiler_params"] = pltpu.CompilerParams(
            vmem_limit_bytes=int(min(8 * slab_bytes + (2 << 20), 100 << 20)))
    # TODO(synk): for very long waveforms, stream the time axis with a grid + carried
    # boundary state instead of one resident slab, and add a 'parallel' lane-group
    # grid axis so v7x's second TensorCore is used.

    out = pl.pallas_call(
        _make_kernel(L, K, NK_pad),
        out_shape=jax.ShapeDtypeStruct((L, NK_pad), jnp.float32),
        in_specs=[
            pl.BlockSpec(memory_space=pltpu.MemorySpace.SMEM),   # coeffs (10,)
            pl.BlockSpec(memory_space=pltpu.MemorySpace.VMEM),   # blk_idx (1, NK_pad)
            pl.BlockSpec(memory_space=pltpu.MemorySpace.VMEM),   # h1 (L, 1)
            pl.BlockSpec(memory_space=pltpu.MemorySpace.VMEM),   # h2 (L, 1)
            pl.BlockSpec(memory_space=pltpu.MemorySpace.VMEM),   # waveform slab (L, NK_pad)
        ],
        out_specs=pl.BlockSpec(memory_space=pltpu.MemorySpace.VMEM),
        **extra,
    )(coeffs, blk_idx, h1j, h2j, x)

    y = out[:, :NK]
    y = jnp.reshape(jnp.transpose(jnp.reshape(y, (L, N, K)), (1, 2, 0)), (N, T_pad))
    y = jnp.reshape(y[:, :T], (B, C, T))
    return y, np.asarray([b0, b1, b2, a1, a2, gain], np.float32)


def _reference(waveform_np, coeffs):
    """Pure numpy reference of the same forward pass (direct serial recurrence)."""
    b0, b1, b2, a1, a2, g = [np.float32(c) for c in coeffs]
    B, C, T = waveform_np.shape
    x = waveform_np.reshape(B * C, T).astype(np.float32)
    y = np.zeros_like(x)
    x1 = x2 = y1 = y2 = np.zeros((B * C,), np.float32)
    for t in range(T):
        x0 = x[:, t]
        y0 = b0 * x0 + b1 * x1 + b2 * x2 - a1 * y1 - a2 * y2
        y[:, t] = np.clip(np.clip(y0, -1.0, 1.0) * g, -1.0, 1.0)
        x2, x1 = x1, x0
        y2, y1 = y1, y0
    return y.reshape(B, C, T)


if __name__ == "__main__":
    key = jax.random.PRNGKey(0)
    B, C, T = 2, 4, 1024
    sr = 16000
    waveform = 0.5 * jax.random.normal(key, (B, C, T), dtype=jnp.float32)
    waveform = jnp.clip(waveform, -1.0, 1.0)

    out, coeffs = audio_preprocessor_forward(waveform, sr, seed=0)
    out = jax.block_until_ready(out)

    ref = _reference(np.asarray(waveform), coeffs)
    # The block-parallel scan reorders f32 arithmetic; low EQ center frequencies
    # (20-100 Hz at 16 kHz) have near-unit-circle poles that amplify rounding, so
    # allow a slightly relaxed absolute tolerance (typical error is < 1e-4).
    np.testing.assert_allclose(np.asarray(out), ref, rtol=1e-3, atol=2e-3)

    print("KERNEL_OK")
</pallas_src>

<mosaic_0001>
module attributes {stable_mosaic.version = 11 : i64} {
  func.func @kernel(%arg0: memref<10xf32, #tpu.memory_space<smem>>, %arg1: memref<1x128xi32, #tpu.memory_space<vmem>>, %arg2: memref<64x1xf32, #tpu.memory_space<vmem>>, %arg3: memref<64x1xf32, #tpu.memory_space<vmem>>, %arg4: memref<64x128xf32, #tpu.memory_space<vmem>>, %arg5: memref<64x128xf32, #tpu.memory_space<vmem>>) attributes {dimension_semantics = [], scalar_prefetch = 0 : i64, scratch_operands = 0 : i64, tpu.core_type = #tpu.core_type<tc>} {
    %c0 = arith.constant 0 : index
    %0 = memref.load %arg0[%c0] : memref<10xf32, #tpu.memory_space<smem>>
    %c1 = arith.constant 1 : index
    %1 = memref.load %arg0[%c1] : memref<10xf32, #tpu.memory_space<smem>>
    %c2 = arith.constant 2 : index
    %2 = memref.load %arg0[%c2] : memref<10xf32, #tpu.memory_space<smem>>
    %c3 = arith.constant 3 : index
    %3 = memref.load %arg0[%c3] : memref<10xf32, #tpu.memory_space<smem>>
    %c4 = arith.constant 4 : index
    %4 = memref.load %arg0[%c4] : memref<10xf32, #tpu.memory_space<smem>>
    %c5 = arith.constant 5 : index
    %5 = memref.load %arg0[%c5] : memref<10xf32, #tpu.memory_space<smem>>
    %c6 = arith.constant 6 : index
    %6 = memref.load %arg0[%c6] : memref<10xf32, #tpu.memory_space<smem>>
    %c7 = arith.constant 7 : index
    %7 = memref.load %arg0[%c7] : memref<10xf32, #tpu.memory_space<smem>>
    %c8 = arith.constant 8 : index
    %8 = memref.load %arg0[%c8] : memref<10xf32, #tpu.memory_space<smem>>
    %c9 = arith.constant 9 : index
    %9 = memref.load %arg0[%c9] : memref<10xf32, #tpu.memory_space<smem>>
    %c0_0 = arith.constant 0 : index
    %c0_1 = arith.constant 0 : index
    %10 = vector.load %arg1[%c0_0, %c0_1] : memref<1x128xi32, #tpu.memory_space<vmem>>, vector<1x128xi32>
    %c0_i32 = arith.constant 0 : i32
    %11 = vector.broadcast %c0_i32 : i32 to vector<1x128xi32>
    %12 = arith.cmpi eq, %10, %11 : vector<1x128xi32>
    %c0_2 = arith.constant 0 : index
    %c0_3 = arith.constant 0 : index
    %13 = vector.load %arg4[%c0_2, %c0_3] : memref<64x128xf32, #tpu.memory_space<vmem>>, vector<64x128xf32>
    %14 = vector.extract_strided_slice %13 {offsets = [63, 0], sizes = [1, 128], strides = [1, 1]} : vector<64x128xf32> to vector<1x128xf32>
    %c1_i32 = arith.constant 1 : i32
    %15 = tpu.dynamic_rotate %14 by %c1_i32 dim 1 : vector<1x128xf32>, i32 -> vector<1x128xf32>
    %cst = arith.constant 0.000000e+00 : f32
    %16 = vector.broadcast %cst : f32 to vector<1x128xf32>
    %17 = arith.select %12, %16, %15 : vector<1x128xi1>, vector<1x128xf32>
    %18 = vector.extract_strided_slice %13 {offsets = [62, 0], sizes = [1, 128], strides = [1, 1]} : vector<64x128xf32> to vector<1x128xf32>
    %c1_i32_4 = arith.constant 1 : i32
    %19 = tpu.dynamic_rotate %18 by %c1_i32_4 dim 1 : vector<1x128xf32>, i32 -> vector<1x128xf32>
    %cst_5 = arith.constant 0.000000e+00 : f32
    %20 = vector.broadcast %cst_5 : f32 to vector<1x128xf32>
    %21 = arith.select %12, %20, %19 : vector<1x128xi1>, vector<1x128xf32>
    %22 = vector.extract_strided_slice %13 {offsets = [0, 0], sizes = [63, 128], strides = [1, 1]} : vector<64x128xf32> to vector<63x128xf32>
    %23 = tpu.concatenate %17, %22 in 0 : vector<1x128xf32>, vector<63x128xf32> -> vector<64x128xf32>
    %24 = vector.extract_strided_slice %13 {offsets = [0, 0], sizes = [62, 128], strides = [1, 1]} : vector<64x128xf32> to vector<62x128xf32>
    %25 = tpu.concatenate %21, %17, %24 in 0 : vector<1x128xf32>, vector<1x128xf32>, vector<62x128xf32> -> vector<64x128xf32>
    %26 = vector.broadcast %0 : f32 to vector<64x128xf32>
    %27 = arith.mulf %26, %13 : vector<64x128xf32>
    %28 = vector.broadcast %1 : f32 to vector<64x128xf32>
    %29 = arith.mulf %28, %23 : vector<64x128xf32>
    %30 = arith.addf %27, %29 : vector<64x128xf32>
    %31 = vector.broadcast %2 : f32 to vector<64x128xf32>
    %32 = arith.mulf %31, %25 : vector<64x128xf32>
    %33 = arith.addf %30, %32 : vector<64x128xf32>
    %c0_6 = arith.constant 0 : index
    %c0_7 = arith.constant 0 : index
    %34 = vector.load %arg5[%c0_6, %c0_7] : memref<64x128xf32, #tpu.memory_space<vmem>>, vector<64x128xf32>
    tpu.vector_store %arg5[%c0_6, %c0_7], %33 {strides = array<i32>} : memref<64x128xf32, #tpu.memory_space<vmem>>, vector<64x128xf32>,
    %35 = vector.broadcast %3 : f32 to vector<1x128xf32>
    %36 = vector.broadcast %4 : f32 to vector<1x128xf32>
    %c0_i32_8 = arith.constant 0 : i32
    %c8_i32 = arith.constant 8 : i32
    %37 = arith.addi %c0_i32_8, %c8_i32 : i32
    %c1_i32_9 = arith.constant 1 : i32
    %38:2 = scf.for %arg6 = %c0_i32_8 to %37 step %c1_i32_9 iter_args(%arg7 = %17, %arg8 = %21) -> (vector<1x128xf32>, vector<1x128xf32>)  : i32 {
      %c8_i32_29 = arith.constant 8 : i32
      %68 = arith.muli %arg6, %c8_i32_29 : i32
      %69 = tpu.assume_multiple %68, 8 : i32
      %70 = arith.index_cast %69 : i32 to index
      %c0_30 = arith.constant 0 : index
      %71 = vector.load %arg5[%70, %c0_30] : memref<64x128xf32, #tpu.memory_space<vmem>>, vector<8x128xf32>
      %72 = vector.extract_strided_slice %71 {offsets = [0, 0], sizes = [1, 128], strides = [1, 1]} : vector<8x128xf32> to vector<1x128xf32>
      %73 = arith.mulf %35, %arg7 : vector<1x128xf32>
      %74 = arith.subf %72, %73 : vector<1x128xf32>
      %75 = arith.mulf %36, %arg8 : vector<1x128xf32>
      %76 = arith.subf %74, %75 : vector<1x128xf32>
      %77 = vector.extract_strided_slice %71 {offsets = [1, 0], sizes = [1, 128], strides = [1, 1]} : vector<8x128xf32> to vector<1x128xf32>
      %78 = arith.mulf %35, %76 : vector<1x128xf32>
      %79 = arith.subf %77, %78 : vector<1x128xf32>
      %80 = arith.mulf %36, %arg7 : vector<1x128xf32>
      %81 = arith.subf %79, %80 : vector<1x128xf32>
      %82 = vector.extract_strided_slice %71 {offsets = [2, 0], sizes = [1, 128], strides = [1, 1]} : vector<8x128xf32> to vector<1x128xf32>
      %83 = arith.mulf %35, %81 : vector<1x128xf32>
      %84 = arith.subf %82, %83 : vector<1x128xf32>
      %85 = arith.mulf %36, %76 : vector<1x128xf32>
      %86 = arith.subf %84, %85 : vector<1x128xf32>
      %87 = vector.extract_strided_slice %71 {offsets = [3, 0], sizes = [1, 128], strides = [1, 1]} : vector<8x128xf32> to vector<1x128xf32>
      %88 = arith.mulf %35, %86 : vector<1x128xf32>
      %89 = arith.subf %87, %88 : vector<1x128xf32>
      %90 = arith.mulf %36, %81 : vector<1x128xf32>
      %91 = arith.subf %89, %90 : vector<1x128xf32>
      %92 = vector.extract_strided_slice %71 {offsets = [4, 0], sizes = [1, 128], strides = [1, 1]} : vector<8x128xf32> to vector<1x128xf32>
      %93 = arith.mulf %35, %91 : vector<1x128xf32>
      %94 = arith.subf %92, %93 : vector<1x128xf32>
      %95 = arith.mulf %36, %86 : vector<1x128xf32>
      %96 = arith.subf %94, %95 : vector<1x128xf32>
      %97 = vector.extract_strided_slice %71 {offsets = [5, 0], sizes = [1, 128], strides = [1, 1]} : vector<8x128xf32> to vector<1x128xf32>
      %98 = arith.mulf %35, %96 : vector<1x128xf32>
      %99 = arith.subf %97, %98 : vector<1x128xf32>
      %100 = arith.mulf %36, %91 : vector<1x128xf32>
      %101 = arith.subf %99, %100 : vector<1x128xf32>
      %102 = vector.extract_strided_slice %71 {offsets = [6, 0], sizes = [1, 128], strides = [1, 1]} : vector<8x128xf32> to vector<1x128xf32>
      %103 = arith.mulf %35, %101 : vector<1x128xf32>
      %104 = arith.subf %102, %103 : vector<1x128xf32>
      %105 = arith.mulf %36, %96 : vector<1x128xf32>
      %106 = arith.subf %104, %105 : vector<1x128xf32>
      %107 = vector.extract_strided_slice %71 {offsets = [7, 0], sizes = [1, 128], strides = [1, 1]} : vector<8x128xf32> to vector<1x128xf32>
      %108 = arith.mulf %35, %106 : vector<1x128xf32>
      %109 = arith.subf %107, %108 : vector<1x128xf32>
      %110 = arith.mulf %36, %101 : vector<1x128xf32>
      %111 = arith.subf %109, %110 : vector<1x128xf32>
      %112 = tpu.concatenate %76, %81, %86, %91, %96, %101, %106, %111 in 0 : vector<1x128xf32>, vector<1x128xf32>, vector<1x128xf32>, vector<1x128xf32>, vector<1x128xf32>, vector<1x128xf32>, vector<1x128xf32>, vector<1x128xf32> -> vector<8x128xf32>
      %113 = arith.index_cast %69 : i32 to index
      %c0_31 = arith.constant 0 : index
      %114 = vector.load %arg5[%113, %c0_31] : memref<64x128xf32, #tpu.memory_space<vmem>>, vector<8x128xf32>
      tpu.vector_store %arg5[%113, %c0_31], %112 {strides = array<i32>} : memref<64x128xf32, #tpu.memory_space<vmem>>, vector<8x128xf32>,
      scf.yield %111, %106 : vector<1x128xf32>, vector<1x128xf32>
    }
    %c8_i32_10 = arith.constant 8 : i32
    %c1_i32_11 = arith.constant 1 : i32
    %39 = tpu.dynamic_rotate %38#0 by %c1_i32_11 dim 1 : vector<1x128xf32>, i32 -> vector<1x128xf32>
    %c1_i32_12 = arith.constant 1 : i32
    %40 = tpu.dynamic_rotate %38#1 by %c1_i32_12 dim 1 : vector<1x128xf32>, i32 -> vector<1x128xf32>
    %cst_13 = arith.constant 0.000000e+00 : f32
    %41 = vector.broadcast %cst_13 : f32 to vector<1x128xf32>
    %c1_i32_14 = arith.constant 1 : i32
    %c15_i32 = arith.constant 15 : i32
    %42 = arith.addi %c1_i32_14, %c15_i32 : i32
    %c1_i32_15 = arith.constant 1 : i32
    %43:2 = scf.for %arg6 = %c1_i32_14 to %42 step %c1_i32_15 iter_args(%arg7 = %41, %arg8 = %41) -> (vector<1x128xf32>, vector<1x128xf32>)  : i32 {
      %c1_i32_29 = arith.constant 1 : i32
      %68 = tpu.dynamic_rotate %arg7 by %c1_i32_29 dim 1 : vector<1x128xf32>, i32 -> vector<1x128xf32>
      %c1_i32_30 = arith.constant 1 : i32
      %69 = tpu.dynamic_rotate %arg8 by %c1_i32_30 dim 1 : vector<1x128xf32>, i32 -> vector<1x128xf32>
      %70 = vector.broadcast %6 : f32 to vector<1x128xf32>
      %71 = arith.mulf %70, %68 : vector<1x128xf32>
      %72 = arith.addf %39, %71 : vector<1x128xf32>
      %73 = vector.broadcast %7 : f32 to vector<1x128xf32>
      %74 = arith.mulf %73, %69 : vector<1x128xf32>
      %75 = arith.addf %72, %74 : vector<1x128xf32>
      %76 = arith.subf %75, %17 : vector<1x128xf32>
      %77 = vector.broadcast %8 : f32 to vector<1x128xf32>
      %78 = arith.mulf %77, %68 : vector<1x128xf32>
      %79 = arith.addf %40, %78 : vector<1x128xf32>
      %80 = vector.broadcast %9 : f32 to vector<1x128xf32>
      %81 = arith.mulf %80, %69 : vector<1x128xf32>
      %82 = arith.addf %79, %81 : vector<1x128xf32>
      %83 = arith.subf %82, %21 : vector<1x128xf32>
      %84 = vector.broadcast %arg6 : i32 to vector<1x128xi32>
      %85 = arith.cmpi eq, %10, %84 : vector<1x128xi32>
      %86 = arith.select %85, %76, %arg7 : vector<1x128xi1>, vector<1x128xf32>
      %87 = arith.select %85, %83, %arg8 : vector<1x128xi1>, vector<1x128xf32>
      scf.yield %86, %87 : vector<1x128xf32>, vector<1x128xf32>
    }
    %c15_i32_16 = arith.constant 15 : i32
    %c0_17 = arith.constant 0 : index
    %c0_18 = arith.constant 0 : index
    %44 = vector.load %arg5[%c0_17, %c0_18] : memref<64x128xf32, #tpu.memory_space<vmem>>, vector<64x128xf32>
    %c0_19 = arith.constant 0 : index
    %c0_20 = arith.constant 0 : index
    %45 = vector.load %arg2[%c0_19, %c0_20] : memref<64x1xf32, #tpu.memory_space<vmem>>, vector<64x1xf32>
    %46 = vector.shape_cast %43#0 : vector<1x128xf32> to vector<1x128xf32>
    %47 = vector.broadcast %46 : vector<1x128xf32> to vector<64x128xf32>
    %48 = vector.broadcast %45 : vector<64x1xf32> to vector<64x128xf32>
    %49 = arith.mulf %48, %47 : vector<64x128xf32>
    %50 = arith.addf %44, %49 : vector<64x128xf32>
    %c0_21 = arith.constant 0 : index
    %c0_22 = arith.constant 0 : index
    %51 = vector.load %arg3[%c0_21, %c0_22] : memref<64x1xf32, #tpu.memory_space<vmem>>, vector<64x1xf32>
    %52 = vector.shape_cast %43#1 : vector<1x128xf32> to vector<1x128xf32>
    %53 = vector.broadcast %52 : vector<1x128xf32> to vector<64x128xf32>
    %54 = vector.broadcast %51 : vector<64x1xf32> to vector<64x128xf32>
    %55 = arith.mulf %54, %53 : vector<64x128xf32>
    %56 = arith.addf %50, %55 : vector<64x128xf32>
    %cst_23 = arith.constant -1.000000e+00 : f32
    %cst_24 = arith.constant 1.000000e+00 : f32
    %57 = vector.broadcast %cst_23 : f32 to vector<64x128xf32>
    %58 = arith.maximumf %57, %56 : vector<64x128xf32>
    %59 = vector.broadcast %cst_24 : f32 to vector<64x128xf32>
    %60 = arith.minimumf %59, %58 : vector<64x128xf32>
    %61 = vector.broadcast %5 : f32 to vector<64x128xf32>
    %62 = arith.mulf %60, %61 : vector<64x128xf32>
    %cst_25 = arith.constant -1.000000e+00 : f32
    %cst_26 = arith.constant 1.000000e+00 : f32
    %63 = vector.broadcast %cst_25 : f32 to vector<64x128xf32>
    %64 = arith.maximumf %63, %62 : vector<64x128xf32>
    %65 = vector.broadcast %cst_26 : f32 to vector<64x128xf32>
    %66 = arith.minimumf %65, %64 : vector<64x128xf32>
    %c0_27 = arith.constant 0 : index
    %c0_28 = arith.constant 0 : index
    %67 = vector.load %arg5[%c0_27, %c0_28] : memref<64x128xf32, #tpu.memory_space<vmem>>, vector<64x128xf32>
    tpu.vector_store %arg5[%c0_27, %c0_28], %66 {strides = array<i32>} : memref<64x128xf32, #tpu.memory_space<vmem>>, vector<64x128xf32>,
    return
  }
}

</mosaic_0001>

<bundles_post_ra>
// kernel: tpu_custom_call.1
= control target key start
LH: loop header
LB: loop body
LE: loop exit
PB: predicated region body
PF: predicated region fallthrough
CT: control target
= control target key end

     0   :  { %10 = vsyncpa [#allocation4], 0  ;;  %s1019_s0 = inlined_call_operand.vmem [shape: f32[10], index: 0, kind: input, shape index: {}]   ;;  %s1020_s1 = inlined_call_operand.vmem [shape: s32[1,128], index: 1, kind: input, shape index: {}]   ;;  %s1021_s2 = inlined_call_operand.vmem [shape: f32[64,1], index: 2, kind: input, shape index: {}]   ;;  %s1022_s3 = inlined_call_operand.vmem [shape: f32[64,1], index: 3, kind: input, shape index: {}]   ;;  %s1023_s4 = inlined_call_operand.vmem [shape: f32[64,128], index: 4, kind: input, shape index: {}]   ;;  %s1024_s5 = inlined_call_operand.hbm [shape: f32[64,128], index: 5, kind: output, shape index: {}]  }
   0x1   :  { %11 = vsyncpa [#allocation3], 0  ;;  %s17_s20 = sshll.u32 %s1019_s0, 4  ;;  %s721_s21 = smov [#allocation2]   ;;  %s18_s20 = int_to_ptr.vmem [resolvable:$true] %s17_s20 }
   0x2   :  { %20 = dma.vmem_to_smem %s18_s20, 16, %s721_s21, [#allocation4]  }
   0x3   :  { %693 = dma.done.wait [#allocation4], 16  }
   0x4   :  { %694 = vsyncadd [#allocation4], 4294967280 }
   0x5   :  { %33 = sfence }
   0x6   :  { %v53_v0 = vld [vmem:[%s1023_s4 + $0x38] sm:$0xff]  ;;  %s34_s24 = sld [smem:[#allocation2]]  ;;  %v50_v3 = vld [vmem:[%s1023_s4 + $0x20] sm:$0xff]  ;;  %v51_v4 = vld [vmem:[%s1023_s4 + $0x28] sm:$0xff]  ;;  %s722_s9 = smov 1   ;;  %vm99_vm0 = vcmask 1041408  }
   0x7   :  { %v767_v1 = vld [vmem:[%s1023_s4 + $0x18] sm:$0xff]  ;;  %v55_v2 = vrot.slane %v53_v0, 7  ;;  %s769_s27 = sld [smem:[#allocation2 + $0x1]]  ;;  %v52_v5 = vld [vmem:[%s1023_s4 + $0x30] sm:$0xff]  ;;  %v80_v7 = vrot.slane %v50_v3, 7  ;;  %v82_v8 = vrot.slane %v51_v4, 7 }
   0x8   :  { %v78_v6 = vrot.slane %v767_v1, 7  ;;  %v84_v9 = vrot.slane %v52_v5, 7  ;;  %s781_s8 = sld [smem:[#allocation2 + $0x2]]  ;;  %v105_v10 = vrot.slane %v767_v1, 6  ;;  %v107_v11 = vrot.slane %v50_v3, 6  ;;  %v46_v46 = vld [vmem:[%s1023_s4] sm:$0xff] }
   0x9   :  { %57 = vrot.lane.b32.xlu0 %v55_v2, %s722_s9  ;;  %vm72_vm1 = vcmask 1040384   ;;  %v60_v12 = vrot.slane %v53_v0, 6  ;;  %v109_v15 = vrot.slane %v51_v4, 6  ;;  %v111_v16 = vrot.slane %v52_v5, 6  ;;  %s789_s10 = sld [smem:[#allocation2 + $0x5]]  ;;  %v47_v47 = vld [vmem:[%s1023_s4 + $0x8] sm:$0xff] }
   0xa   :  { %v81_v13 = vsel %vm72_vm1, %v78_v6, %v80_v7  ;;  %v83_v14 = vsel %vm72_vm1, %v80_v7, %v82_v8  ;;  %v85_v17 = vsel %vm72_vm1, %v82_v8, %v84_v9  ;;  %v86_v18 = vsel %vm72_vm1, %v84_v9, %v55_v2  ;;  %s798_s11 = sld [smem:[#allocation2 + $0x6]]  ;;  %v48_v48 = vld [vmem:[%s1023_s4 + $0x10] sm:$0xff] }
   0xb   :  { %v108_v20 = vsel %vm99_vm0, %v105_v10, %v107_v11  ;;  %s804_s12 = sld [smem:[#allocation2 + $0x7]]  ;;  %v110_v26 = vsel %vm99_vm0, %v107_v11, %v109_v15  ;;  %v112_v27 = vsel %vm99_vm0, %v109_v15, %v111_v16  ;;  %v113_v28 = vsel %vm99_vm0, %v111_v16, %v60_v12 }
   0xc   :  { %v793_v19 = vstv %s34_s24  ;;  %s812_s13 = sld [smem:[#allocation2 + $0x8]]  ;;  %v73_v49 = vrot.slane %v46_v46, 7  ;;  %v74_v50 = vrot.slane %v47_v47, 7  ;;  %v76_v51 = vrot.slane %v48_v48, 7 }
   0xd   :  { %v129_v21 = vmul.f32 %v793_v19, %v50_v3  ;;  %v130_v22 = vmul.f32 %v793_v19, %v51_v4  ;;  %v131_v23 = vmul.f32 %v793_v19, %v52_v5  ;;  %v132_v24 = vmul.f32 %v793_v19, %v53_v0  ;;  %s818_s14 = sld [smem:[#allocation2 + $0x9]] }
   0xe   :  { %v807_v25 = vstv %s769_s27  ;;  %v821_v33 = vstv %s781_s8  ;;  %v75_v52 = vsel %vm72_vm1, %v73_v49, %v74_v50  ;;  %v77_v53 = vsel %vm72_vm1, %v74_v50, %v76_v51  ;;  %s551_s4 = sld [smem:[#allocation2 + $0x3]] }
   0xf   :  { %v138_v29 = vmul.f32 %v807_v25, %v81_v13  ;;  %v139_v30 = vmul.f32 %v807_v25, %v83_v14  ;;  %v140_v31 = vmul.f32 %v807_v25, %v85_v17  ;;  %v141_v32 = vmul.f32 %v807_v25, %v86_v18  ;;  %s552_s21 = sld [smem:[#allocation2 + $0x4]] }
  0x10   :  { %v155_v38 = vmul.f32 %v821_v33, %v108_v20  ;;  %v156_v39 = vmul.f32 %v821_v33, %v110_v26  ;;  %v157_v40 = vmul.f32 %v821_v33, %v112_v27  ;;  %v158_v41 = vmul.f32 %v821_v33, %v113_v28 }
  0x11   :  { %v146_v34 = vadd.f32 %v138_v29, %v129_v21  ;;  %v147_v35 = vadd.f32 %v139_v30, %v130_v22  ;;  %v148_v36 = vadd.f32 %v140_v31, %v131_v23  ;;  %v149_v37 = vadd.f32 %v141_v32, %v132_v24  ;;  %62 = vrot.lane.b32.xlu0 %v60_v12, %s722_s9 }
  0x12   :  { %v79_v54 = vsel %vm72_vm1, %v76_v51, %v78_v6  ;;  %v126_v55 = vmul.f32 %v793_v19, %v47_v47  ;;  %v127_v56 = vmul.f32 %v793_v19, %v48_v48  ;;  %v128_v57 = vmul.f32 %v793_v19, %v767_v1  ;;  %v864_v1 = vld [vmem:[%s1020_s1] sm:$0x1]  ;;  %s886_s1 = smov 0  }
  0x13   :  { %v163_v42 = vadd.f32 %v155_v38, %v146_v34  ;;  %v164_v43 = vadd.f32 %v156_v39, %v147_v35  ;;  %v165_v44 = vadd.f32 %v157_v40, %v148_v36  ;;  %v166_v45 = vadd.f32 %v158_v41, %v149_v37 }
  0x14   :  { %v135_v58 = vmul.f32 %v807_v25, %v75_v52  ;;  %v136_v59 = vmul.f32 %v807_v25, %v77_v53  ;;  %v137_v60 = vmul.f32 %v807_v25, %v79_v54  ;;  %v100_v61 = vrot.slane %v46_v46, 6 }
  0x15   :  { %171 = vst [vmem:[#allocation5 + $0x20] sm:$0xff] %v163_v42  ;;  %v101_v62 = vrot.slane %v47_v47, 6  ;;  %v103_v63 = vrot.slane %v48_v48, 6  ;;  %v857_v14 = vstv %s551_s4  ;;  %v859_v15 = vstv %s552_s21 }
  0x16   :  { %172 = vst [vmem:[#allocation5 + $0x28] sm:$0xff] %v164_v43  ;;  %v143_v0 = vadd.f32 %v135_v58, %v126_v55  ;;  %v144_v2 = vadd.f32 %v136_v59, %v127_v56  ;;  %v145_v3 = vadd.f32 %v137_v60, %v128_v57  ;;  %vm45_vm2 = vcmp.eq.s32.totalorder %v864_v1, 0 }
  0x17   :  { %173 = vst [vmem:[#allocation5 + $0x30] sm:$0xff] %v165_v44  ;;  %v102_v4 = vsel %vm99_vm0, %v100_v61, %v101_v62  ;;  %v104_v5 = vsel %vm99_vm0, %v101_v62, %v103_v63  ;;  %v106_v6 = vsel %vm99_vm0, %v103_v63, %v105_v10  ;;  %v125_v20 = vmul.f32 %v793_v19, %v46_v46 }
  0x18   :  { %174 = vst [vmem:[#allocation5 + $0x38] sm:$0xff] %v166_v45  ;;  %v152_v7 = vmul.f32 %v821_v33, %v102_v4  ;;  %v153_v8 = vmul.f32 %v821_v33, %v104_v5  ;;  %v154_v9 = vmul.f32 %v821_v33, %v106_v6 }
  0x1a   :  { %v160_v11 = vadd.f32 %v152_v7, %v143_v0  ;;  %v161_v12 = vadd.f32 %v153_v8, %v144_v2  ;;  %v162_v13 = vadd.f32 %v154_v9, %v145_v3 }
  0x1c   :  { %168 = vst [vmem:[#allocation5 + $0x8] sm:$0xff] %v160_v11 }
  0x1d   :  { %169 = vst [vmem:[#allocation5 + $0x10] sm:$0xff] %v161_v12 }
  0x1e   :  { %170 = vst [vmem:[#allocation5 + $0x18] sm:$0xff] %v162_v13 }
  0x7b   :  { %v58_v10 = vpop.permute.xlu0 %57 }
  0x7c   :  { %v867_v16 = vsel %vm45_vm2, 0.0, %v58_v10  }
  0x7d   :  { %v95_v17 = vsel %vm72_vm1, %v867_v16, %v73_v49  ;;  %v97_v18 = vperm.slane %v867_v16, 0  ;;  %v1026_v19 = vmov %v867_v16 }
  0x7e   :  { %v134_v21 = vmul.f32 %v807_v25, %v95_v17 }
  0x80   :  { %v142_v27 = vadd.f32 %v134_v21, %v125_v20 }
  0x83   :  { %v63_v22 = vpop.permute.xlu0 %62 }
  0x84   :  { %v874_v23 = vsel %vm45_vm2, 0.0, %v63_v22  }
  0x85   :  { %v122_v24 = vsel %vm72_vm1, %v874_v23, %v97_v18  ;;  %v1025_v30 = vmov %v874_v23 }
  0x86   :  { %v123_v26 = vsel %vm99_vm0, %v122_v24, %v100_v61 }
  0x87   :  { %v151_v28 = vmul.f32 %v821_v33, %v123_v26 }
  0x89   :  { %v159_v29 = vadd.f32 %v151_v28, %v142_v27 }
  0x8b   :  { %167 = vst [vmem:[#allocation5] sm:$0xff] %v159_v29 }
  0x8c LB: > { %s558_s24 = sshll.u32 %s707_s1, 3  ;;  %v188_v25 = vmul.f32 %v703_v19, %v857_v14  ;;  %v190_v31 = vmul.f32 %v699_v30, %v859_v15  ;;  %v197_v35 = vmul.f32 %v703_v19, %v859_v15  ;;  %vm264_vm3 = vcmask 1042432   ;;  %s182_s1 = sadd.s32 1, %s707_s1   ;;  %s707_s1 = sphi %s886_s1, %s182_s1   ;;  %v703_v19 = vphi %v1026_v19, %v1028_v19   ;;  %v699_v30 = vphi %v1025_v30, %v1027_v30  }
  0x8d   : > { %s896_s25 = scalar_lea.vmem [#allocation5], %s558_s24  ;;  %vm266_vm4 = vcmask 1043456   ;;  %vm268_vm5 = vcmask 1044480   ;;  %vm270_vm6 = vcmask 1045504   ;;  %vm272_vm7 = vcmask 1046528   ;;  %p179_p0 = scmp.ge.s32.totalorder %s182_s1, 8  }
  0x8e   : > { %v199_v38 = vrot.slane %v197_v35, 7  ;;  %s925_s26 = smov (%p179_p0), 1  }
  0x92   : > { %v187_v32 = vld [vmem:[%s896_s25] sm:$0xff] }
  0x93   : > { %v189_v33 = vsub.f32 %v187_v32, %v188_v25  ;;  %v709_v25 = vmov (%p179_p0), 0.0  }
  0x95   : > { %v191_v34 = vsub.f32 %v189_v33, %v190_v31  ;;  %v713_v31 = vmov (%p179_p0), 0.0  }
  0x97   : > { %v192_v36 = vmul.f32 %v191_v34, %v857_v14  ;;  %v207_v41 = vmul.f32 %v191_v34, %v859_v15 }
  0x99   : > { %v194_v37 = vrot.slane %v192_v36, 7  ;;  %v209_v44 = vrot.slane %v207_v41, 6 }
  0x9b   : > { %v196_v39 = vsub.f32 %v187_v32, %v194_v37 }
  0x9d   : > { %v201_v40 = vsub.f32 %v196_v39, %v199_v38 }
  0x9f   : > { %v202_v42 = vmul.f32 %v201_v40, %v857_v14  ;;  %v217_v47 = vmul.f32 %v201_v40, %v859_v15  ;;  %v262_v3 = vsel %vm72_vm1, %v191_v34, %v201_v40 }
  0xa1   : > { %v204_v43 = vrot.slane %v202_v42, 7  ;;  %v219_v50 = vrot.slane %v217_v47, 6 }
  0xa3   : > { %v206_v45 = vsub.f32 %v187_v32, %v204_v43 }
  0xa5   : > { %v211_v46 = vsub.f32 %v206_v45, %v209_v44 }
  0xa7   : > { %v212_v48 = vmul.f32 %v211_v46, %v857_v14  ;;  %v227_v53 = vmul.f32 %v211_v46, %v859_v15  ;;  %v263_v5 = vsel %vm99_vm0, %v262_v3, %v211_v46 }
  0xa9   : > { %v214_v49 = vrot.slane %v212_v48, 7  ;;  %v229_v56 = vrot.slane %v227_v53, 6 }
  0xab   : > { %v216_v51 = vsub.f32 %v187_v32, %v214_v49 }
  0xad   : > { %v221_v52 = vsub.f32 %v216_v51, %v219_v50 }
  0xaf   : > { %v222_v54 = vmul.f32 %v221_v52, %v857_v14  ;;  %v237_v59 = vmul.f32 %v221_v52, %v859_v15  ;;  %v265_v9 = vsel %vm264_vm3, %v263_v5, %v221_v52 }
  0xb1   : > { %v224_v55 = vrot.slane %v222_v54, 7  ;;  %v239_v62 = vrot.slane %v237_v59, 6 }
  0xb3   : > { %v226_v57 = vsub.f32 %v187_v32, %v224_v55 }
  0xb5   : > { %v231_v58 = vsub.f32 %v226_v57, %v229_v56 }
  0xb7   : > { %v232_v60 = vmul.f32 %v231_v58, %v857_v14  ;;  %v247_v2 = vmul.f32 %v231_v58, %v859_v15  ;;  %v267_v13 = vsel %vm266_vm4, %v265_v9, %v231_v58 }
  0xb9   : > { %v234_v61 = vrot.slane %v232_v60, 7  ;;  %v249_v7 = vrot.slane %v247_v2, 6 }
  0xbb   : > { %v236_v63 = vsub.f32 %v187_v32, %v234_v61 }
  0xbd   : > { %v241_v0 = vsub.f32 %v236_v63, %v239_v62 }
  0xbf   : > { %v242_v4 = vmul.f32 %v241_v0, %v857_v14  ;;  %v257_v12 = vmul.f32 %v241_v0, %v859_v15  ;;  %v269_v21 = vsel %vm268_vm5, %v267_v13, %v241_v0 }
  0xc1   : > { %v244_v6 = vrot.slane %v242_v4, 7  ;;  %v259_v20 = vrot.slane %v257_v12, 6 }
  0xc3   : > { %v246_v8 = vsub.f32 %v187_v32, %v244_v6 }
  0xc5   : > { %v251_v11 = vsub.f32 %v246_v8, %v249_v7 }
  0xc7   : > { %v252_v10 = vmul.f32 %v251_v11, %v857_v14  ;;  %v279_v17 = vrot.slane %v251_v11, 6   ;;  %v271_v24 = vsel %vm270_vm6, %v269_v21, %v251_v11 }
  0xc9   : > { %v254_v18 = vrot.slane %v252_v10, 7  ;;  %v1027_v30 = vmov %v279_v17 }
  0xcb   : > { %v256_v22 = vsub.f32 %v187_v32, %v254_v18 }
  0xcd   : > { %v261_v26 = vsub.f32 %v256_v22, %v259_v20  ;;  %181 = sbr.rel (!%p179_p0) target bundleno = 140 (0x8c), region = 59 }
  0xcf   : > { %v273_v27 = vsel %vm272_vm7, %v271_v24, %v261_v26  ;;  %v276_v28 = vrot.slane %v261_v26, 7  }
  0xd0   : > { %274 = vst [vmem:[%s896_s25] sm:$0xff] %v273_v27 }
  0xd1   : > { %v1028_v19 = vmov %v276_v28  ;;  %281 = vrot.lane.b32.xlu0 (%p179_p0), %v276_v28, %s722_s9 }
  0xd9   :  { %283 = vrot.lane.b32.xlu0 %v279_v17, %s722_s9 }
 0x143   :  { %v282_v29 = vpop.permute.xlu0 %281 }
 0x14b   :  { %v284_v19 = vpop.permute.xlu0 %283 }
 0x14c LB: > { %s723_s27 = smov 1   ;;  %v297_v15 = vstv %s798_s11  ;;  %v304_v30 = vstv %s812_s13  ;;  %v300_v34 = vstv %s804_s12  ;;  %v307_v35 = vstv %s818_s14  ;;  %s719_s26 = sphi %s925_s26, %s290_s26   ;;  %v715_v31 = vphi %v713_v31, %v714_v31   ;;  %v711_v25 = vphi %v709_v25, %v710_v25  }
 0x14d   : > { %293 = vrot.lane.b32.xlu0 %v715_v31, %s723_s27  ;;  %v311_v36 = vstv %s719_s26  ;;  %s290_s26 = sadd.s32 1, %s719_s26  }
 0x14e   : > { %vm312_vm8 = vcmp.eq.s32.totalorder %v864_v1, %v311_v36  ;;  %p287_p1 = scmp.ge.s32.totalorder %s290_s26, 16  }
 0x14f   :  { %v327_v48 = vld [vmem:[%s1021_s2 + $0x20] sm:$0xff] (%p287_p1)  ;;  %v325_v49 = vld [vmem:[%s1021_s2 + $0x10] sm:$0xff] (%p287_p1)  ;;  %v724_v51 = vmov (%p287_p1), 0   ;;  %v328_v1 = vld [vmem:[%s1021_s2 + $0x28] sm:$0xff] (%p287_p1)  ;;  %v992_v13 = vstv (%p287_p1), %s789_s10  ;;  %s512_s8 = sshll.u32 (%p287_p1), %s1024_s5, 4  ;;  %s726_s9 = smov (%p287_p1), 128   ;;  %s513_s8 = int_to_ptr.hbm [resolvable:$true] %s512_s8 }
 0x150   :  { %v323_v50 = vld [vmem:[%s1021_s2] sm:$0xff] (%p287_p1)  ;;  %632 = vset.pattern.permute.xlu2 (%p287_p1), %v724_v51  ;;  %631 = vset.pattern.permute.xlu1 (%p287_p1), %v724_v51  ;;  %v330_v53 = vld [vmem:[%s1021_s2 + $0x38] sm:$0xff] (%p287_p1)  ;;  %v329_v54 = vld [vmem:[%s1021_s2 + $0x30] sm:$0xff] (%p287_p1)  ;;  %s727_s11 = smov (%p287_p1), 8  }
 0x151   :  { %630 = vset.pattern.permute.xlu0 (%p287_p1), %v724_v51  ;;  %356 = vperm.xlu2 (%p287_p1), %632, %v327_v48   ;;  %v390_v52 = vld [vmem:[%s1022_s3] sm:$0xff] (%p287_p1)  ;;  %v393_v55 = vld [vmem:[%s1022_s3 + $0x18] sm:$0xff] (%p287_p1)  ;;  %v392_v56 = vld [vmem:[%s1022_s3 + $0x10] sm:$0xff] (%p287_p1) }
 0x152   :  { %346 = vperm.xlu1 (%p287_p1), %631, %v325_v49   ;;  %v391_v57 = vld [vmem:[%s1022_s3 + $0x8] sm:$0xff] (%p287_p1)  ;;  %v396_v58 = vld [vmem:[%s1022_s3 + $0x30] sm:$0xff] (%p287_p1)  ;;  %v394_v60 = vld [vmem:[%s1022_s3 + $0x20] sm:$0xff] (%p287_p1) }
 0x153   :  { %v395_v59 = vld [vmem:[%s1022_s3 + $0x28] sm:$0xff] (%p287_p1)  ;;  %v397_v61 = vld [vmem:[%s1022_s3 + $0x38] sm:$0xff] (%p287_p1)  ;;  %v315_v6 = vld [vmem:[#allocation5] sm:$0xff] (%p287_p1)  ;;  %s725_s3 = smov (%p287_p1), [#allocation5]  }
 0x154   :  { %v318_v18 = vld [vmem:[#allocation5 + $0x18] sm:$0xff] (%p287_p1)  ;;  %v317_v36 = vld [vmem:[#allocation5 + $0x10] sm:$0xff] (%p287_p1)  ;;  %s510_s10 = sshll.u32 (%p287_p1), %s725_s3, 4  ;;  %s511_s10 = int_to_ptr.vmem [resolvable:$true] %s510_s10 }
 0x155   : > { %295 = vrot.lane.b32.xlu0 %v711_v25, %s723_s27 }
 0x159   :  { %361 = vperm.xlu2 (%p287_p1), %632, %v328_v1  }
 0x15d   :  { %336 = vperm.xlu0 (%p287_p1), %630, %v323_v50  }
 0x161   :  { %403 = vperm.xlu2 (%p287_p1), %632, %v390_v52  }
 0x169   :  { %418 = vperm.xlu2 (%p287_p1), %632, %v393_v55  }
 0x171   :  { %433 = vperm.xlu2 (%p287_p1), %632, %v396_v58  }
 0x1ab   :  { %v357_v62 = vpop.permute.xlu2 (%p287_p1), %356 }
 0x1b3   :  { %v362_v63 = vpop.permute.xlu2 (%p287_p1), %361 }
 0x1bb   :  { %v404_v0 = vpop.permute.xlu2 (%p287_p1), %403 }
 0x1bf   : > { %v294_v14 = vpop.permute.xlu0 %293 }
 0x1c0   : > { %v298_v32 = vmul.f32 %v297_v15, %v294_v14  ;;  %v305_v33 = vmul.f32 %v304_v30, %v294_v14  ;;  %v321_v14 = vld [vmem:[#allocation5 + $0x30] sm:$0xff] (%p287_p1) }
 0x1c2   : > { %v299_v38 = vadd.f32 %v298_v32, %v282_v29  ;;  %v306_v39 = vadd.f32 %v305_v33, %v284_v19 }
 0x1c3   :  { %v419_v11 = vpop.permute.xlu2 (%p287_p1), %418 }
 0x1c4   :  { %v347_v4 = vpop.permute.xlu1 (%p287_p1), %346 }
 0x1c7   : > { %v296_v37 = vpop.permute.xlu0 %295 }
 0x1c8   : > { %v301_v40 = vmul.f32 %v300_v34, %v296_v37  ;;  %v308_v41 = vmul.f32 %v307_v35, %v296_v37 }
 0x1ca   : > { %v302_v42 = vadd.f32 %v301_v40, %v299_v38  ;;  %v309_v43 = vadd.f32 %v308_v41, %v306_v39  ;;  %v316_v39 = vld [vmem:[#allocation5 + $0x8] sm:$0xff] (%p287_p1) }
 0x1cb   :  { %289 = sbr.rel (!%p287_p1) target bundleno = 332 (0x14c), region = 70  ;;  %v434_v29 = vpop.permute.xlu2 (%p287_p1), %433 }
 0x1cc   : > { %v303_v44 = vsub.f32 %v302_v42, %v867_v16  ;;  %v310_v45 = vsub.f32 %v309_v43, %v874_v23  ;;  %v326_v16 = vld [vmem:[%s1021_s2 + $0x18] sm:$0xff] (%p287_p1)  ;;  %v324_v23 = vld [vmem:[%s1021_s2 + $0x8] sm:$0xff] (%p287_p1) }
 0x1cd   :  { %351 = vperm.xlu1 (%p287_p1), %631, %v326_v16   ;;  %341 = vperm.xlu0 (%p287_p1), %630, %v324_v23   ;;  %v319_v16 = vld [vmem:[#allocation5 + $0x20] sm:$0xff] (%p287_p1)  ;;  %v320_v23 = vld [vmem:[#allocation5 + $0x28] sm:$0xff] (%p287_p1) }
 0x1ce   : > { %v313_v46 = vsel %vm312_vm8, %v303_v44, %v715_v31   ;;  %v314_v47 = vsel %vm312_vm8, %v310_v45, %v711_v25  }
 0x1cf   : > { %v710_v25 = vmov %v314_v47   ;;  %v714_v31 = vmov %v313_v46   ;;  %v985_v2 = vperm.slane (%p287_p1), %v313_v46, 0  ;;  %v987_v3 = vperm.slane (%p287_p1), %v314_v47, 0  ;;  %v337_v5 = vpop.permute.xlu0 (%p287_p1), %336 }
 0x1d1   :  { %v441_v7 = vmul.f32 %v404_v0, %v987_v3  ;;  %v374_v8 = vmul.f32 %v337_v5, %v985_v2  ;;  %v444_v24 = vmul.f32 %v419_v11, %v987_v3  ;;  %v447_v32 = vmul.f32 %v434_v29, %v987_v3 }
 0x1d2   :  { %v376_v35 = vmul.f32 %v347_v4, %v985_v2  ;;  %v378_v51 = vmul.f32 %v357_v62, %v985_v2  ;;  %v379_v1 = vmul.f32 %v362_v63, %v985_v2 }
 0x1d3   :  { %v382_v9 = vadd.f32 %v374_v8, %v315_v6  ;;  %v322_v8 = vld [vmem:[#allocation5 + $0x38] sm:$0xff] }
 0x1d4   :  { %v384_v41 = vadd.f32 %v376_v35, %v317_v36 }
 0x1d5   :  { %371 = vperm.xlu1 %631, %v330_v53   ;;  %366 = vperm.xlu0 %630, %v329_v54   ;;  %v449_v12 = vadd.f32 %v441_v7, %v382_v9 }
 0x1d7   :  { %v559_v10 = vclamps-f32 %v449_v12, 1.0 }
 0x1d9   :  { %v474_v21 = vmul.f32 %v559_v10, %v992_v13 }
 0x1db   :  { %v567_v26 = vclamps-f32 %v474_v21, 1.0 }
 0x1dd   :  { %413 = vperm.xlu1 %631, %v392_v56   ;;  %408 = vperm.xlu0 %630, %v391_v57   ;;  %498 = vst [vmem:[#allocation5] sm:$0xff] %v567_v26  ;;  %v386_v56 = vadd.f32 %v378_v51, %v319_v16  ;;  %v387_v57 = vadd.f32 %v379_v1, %v320_v23 }
 0x1e5   :  { %428 = vperm.xlu1 %631, %v395_v59   ;;  %423 = vperm.xlu0 %630, %v394_v60  }
 0x1ed   :  { %438 = vperm.xlu0 %630, %v397_v61  }
 0x23f   :  { %v352_v17 = vpop.permute.xlu1 %351  ;;  %v342_v20 = vpop.permute.xlu0 %341 }
 0x240   :  { %v377_v22 = vmul.f32 %v352_v17, %v985_v2  ;;  %v375_v37 = vmul.f32 %v342_v20, %v985_v2 }
 0x242   :  { %v385_v27 = vadd.f32 %v377_v22, %v318_v18  ;;  %v383_v44 = vadd.f32 %v375_v37, %v316_v39 }
 0x244   :  { %v452_v28 = vadd.f32 %v444_v24, %v385_v27 }
 0x246   :  { %v562_v19 = vclamps-f32 %v452_v28, 1.0 }
 0x247   :  { %v372_v25 = vpop.permute.xlu1 %371  ;;  %v367_v31 = vpop.permute.xlu0 %366 }
 0x248   :  { %v477_v15 = vmul.f32 %v562_v19, %v992_v13  ;;  %v380_v30 = vmul.f32 %v367_v31, %v985_v2  ;;  %v381_v5 = vmul.f32 %v372_v25, %v985_v2 }
 0x24a   :  { %v570_v33 = vclamps-f32 %v477_v15, 1.0  ;;  %v388_v34 = vadd.f32 %v380_v30, %v321_v14  ;;  %v389_v10 = vadd.f32 %v381_v5, %v322_v8 }
 0x24c   :  { %501 = vst [vmem:[#allocation5 + $0x18] sm:$0xff] %v570_v33  ;;  %v455_v38 = vadd.f32 %v447_v32, %v388_v34 }
 0x24e   :  { %v565_v40 = vclamps-f32 %v455_v38, 1.0 }
 0x24f   :  { %v414_v42 = vpop.permute.xlu1 %413  ;;  %v409_v43 = vpop.permute.xlu0 %408 }
 0x250   :  { %v480_v45 = vmul.f32 %v565_v40, %v992_v13  ;;  %v443_v46 = vmul.f32 %v414_v42, %v987_v3  ;;  %v442_v47 = vmul.f32 %v409_v43, %v987_v3 }
 0x252   :  { %v573_v48 = vclamps-f32 %v480_v45, 1.0  ;;  %v451_v49 = vadd.f32 %v443_v46, %v384_v41  ;;  %v450_v50 = vadd.f32 %v442_v47, %v383_v44 }
 0x254   :  { %504 = vst [vmem:[#allocation5 + $0x30] sm:$0xff] %v573_v48  ;;  %v561_v52 = vclamps-f32 %v451_v49, 1.0  ;;  %v560_v53 = vclamps-f32 %v450_v50, 1.0 }
 0x256   :  { %v476_v54 = vmul.f32 %v561_v52, %v992_v13  ;;  %v475_v55 = vmul.f32 %v560_v53, %v992_v13 }
 0x257   :  { %v429_v58 = vpop.permute.xlu1 %428  ;;  %v424_v59 = vpop.permute.xlu0 %423 }
 0x258   :  { %v569_v60 = vclamps-f32 %v476_v54, 1.0  ;;  %v568_v61 = vclamps-f32 %v475_v55, 1.0  ;;  %v446_v0 = vmul.f32 %v429_v58, %v987_v3  ;;  %v445_v62 = vmul.f32 %v424_v59, %v987_v3 }
 0x25a   :  { %500 = vst [vmem:[#allocation5 + $0x10] sm:$0xff] %v569_v60  ;;  %v454_v63 = vadd.f32 %v446_v0, %v387_v57  ;;  %v453_v4 = vadd.f32 %v445_v62, %v386_v56 }
 0x25b   :  { %499 = vst [vmem:[#allocation5 + $0x8] sm:$0xff] %v568_v61 }
 0x25c   :  { %v564_v6 = vclamps-f32 %v454_v63, 1.0  ;;  %v563_v7 = vclamps-f32 %v453_v4, 1.0 }
 0x25e   :  { %v479_v9 = vmul.f32 %v564_v6, %v992_v13  ;;  %v478_v11 = vmul.f32 %v563_v7, %v992_v13 }
 0x25f   :  { %v439_v12 = vpop.permute.xlu0 %438 }
 0x260   :  { %v572_v17 = vclamps-f32 %v479_v9, 1.0  ;;  %v571_v18 = vclamps-f32 %v478_v11, 1.0  ;;  %v448_v20 = vmul.f32 %v439_v12, %v987_v3 }
 0x262   :  { %503 = vst [vmem:[#allocation5 + $0x28] sm:$0xff] %v572_v17  ;;  %v456_v21 = vadd.f32 %v448_v20, %v389_v10 }
 0x263   :  { %502 = vst [vmem:[#allocation5 + $0x20] sm:$0xff] %v571_v18 }
 0x264   :  { %v566_v22 = vclamps-f32 %v456_v21, 1.0 }
 0x266   :  { %v481_v2 = vmul.f32 %v566_v22, %v992_v13 }
 0x268   :  { %v574_v24 = vclamps-f32 %v481_v2, 1.0 }
 0x26a   :  { %505 = vst [vmem:[#allocation5 + $0x38] sm:$0xff] %v574_v24 }
 0x26b   :  { %518 = dma.vmem_to_hbm [thread:$0]  %s511_s10, 1024, %s513_s8, [#allocation3], %s726_s9, %s726_s9, %s727_s11  }
 0x26c   :  { %695 = dma.done.wait [#allocation3], 1024  }
 0x26d   :  { %696 = vsyncadd [#allocation3], 4294966272 }
 0x26e   :  { %523 = vsyncpa [#allocation3], 1 }
 0x26f   :  { %524 = vsyncpa [#allocation4], 1 }

</bundles_post_ra>
